<compile_context>
chip_gen: v5e
topology: v5e:2x2
jax: 0.10.0
libtpu: 0.0.40
codegen_flags: <defaults>
</compile_context>

<pallas_src>
import jax
import jax.numpy as jnp
from jax.experimental import pallas as pl
from jax.experimental.pallas import tpu as pltpu  # noqa: F401  (TPU backend)


# ----------------------------------------------------------------------------
# Fully fused Decoder kernel: embedding gather + LSTM recurrence + fc_out.
# Gate order follows PyTorch: i, f, g, o.
# ----------------------------------------------------------------------------
def _decoder_kernel(tok_ref, emb_tab_ref, wih_ref, whh_ref, bias_ref,
                    fcw_ref, fcb_ref,
                    pred_ref, hN_ref, cN_ref):
    SB = tok_ref.shape[0]          # S * B
    V = emb_tab_ref.shape[0]       # vocab
    B, H = hN_ref.shape
    S = SB // B

    # ---- fused embedding gather: one-hot matmul against the VMEM-resident
    #      table (avoids a separate XLA gather + HBM round-trip of emb) ----
    tok = tok_ref[...]                                             # [S*B, 1] i32
    lane_ids = jax.lax.broadcasted_iota(jnp.int32, (SB, V), 1)     # [S*B, V]
    one_hot = (tok == lane_ids).astype(jnp.float32)
    emb2d = jnp.dot(one_hot, emb_tab_ref[...],
                    preferred_element_type=jnp.float32)            # [S*B, E]
    # Dropout = identity (eval mode).
    # TODO(synk): training-mode dropout (p=0.3) not implemented.

    # ---- hoisted input projection: no serial dependence, one batched matmul,
    #      with the pre-combined (b_ih + b_hh) bias added once ----
    gates_x = (jnp.dot(emb2d, wih_ref[...],
                       preferred_element_type=jnp.float32)
               + bias_ref[...])                                    # [S*B, 4H]

    # ---- LSTM recurrence, fully unrolled (S small & static) ----
    w_hh = whh_ref[...]                                            # [H, 4H]
    h = jnp.zeros((B, H), jnp.float32)
    c = jnp.zeros((B, H), jnp.float32)
    outs = []
    for t in range(S):
        gates = gates_x[t * B:(t + 1) * B, :] + jnp.dot(
            h, w_hh, preferred_element_type=jnp.float32)           # [B, 4H]
        i_g = jax.nn.sigmoid(gates[:, 0 * H:1 * H])
        f_g = jax.nn.sigmoid(gates[:, 1 * H:2 * H])
        g_g = jnp.tanh(gates[:, 2 * H:3 * H])
        o_g = jax.nn.sigmoid(gates[:, 3 * H:4 * H])
        c = f_g * c + i_g * g_g
        h = o_g * jnp.tanh(c)
        outs.append(h)

    out2d = jnp.concatenate(outs, axis=0)                          # [S*B, H]

    # ---- fused fc_out on VMEM-resident activations; lane-dense (padded) store ----
    pred_ref[...] = (jnp.dot(out2d, fcw_ref[...],
                             preferred_element_type=jnp.float32)
                     + fcb_ref[...])                               # [S*B, Vp]
    # Final states written unconditionally at loop exit.
    hN_ref[...] = h
    cN_ref[...] = c


def decoder_fused(tok2d, emb_tab, w_ih, w_hh, bias, fc_w_pad, fc_b_pad, *, batch):
    """Single gridless pallas_call; everything is VMEM-resident at these sizes."""
    SB = tok2d.shape[0]
    H = w_hh.shape[0]
    Vp = fc_w_pad.shape[1]
    out_shapes = (
        jax.ShapeDtypeStruct((SB, Vp), jnp.float32),     # padded predictions
        jax.ShapeDtypeStruct((batch, H), jnp.float32),   # final hidden
        jax.ShapeDtypeStruct((batch, H), jnp.float32),   # final cell
    )
    return pl.pallas_call(
        _decoder_kernel,
        out_shape=out_shapes,
    )(tok2d, emb_tab, w_ih, w_hh, bias, fc_w_pad, fc_b_pad)


# ----------------------------------------------------------------------------
# Parameter preparation (outside the jitted forward): combine the two LSTM
# biases and pad fc_out to a 128-lane output slab.
# ----------------------------------------------------------------------------
def prepare_params(raw, lane=128):
    H, V = raw["fc_w_t"].shape
    Vp = ((V + lane - 1) // lane) * lane
    fc_w_pad = jnp.zeros((H, Vp), jnp.float32).at[:, :V].set(raw["fc_w_t"])
    fc_b_pad = jnp.zeros((1, Vp), jnp.float32).at[:, :V].set(raw["fc_b"])
    return {
        "embedding": raw["embedding"],
        "w_ih": raw["w_ih"],
        "w_hh": raw["w_hh"],
        "bias": raw["b_ih"] + raw["b_hh"],
        "fc_w_pad": fc_w_pad,
        "fc_b_pad": fc_b_pad,
    }


# ----------------------------------------------------------------------------
# Full Decoder forward (hidden/cell inputs of the PyTorch signature are unused
# by the module's own LSTM call, so they are not taken here).
# ----------------------------------------------------------------------------
@jax.jit
def decoder_forward(tokens, prepped):
    S, B = tokens.shape
    V = prepped["embedding"].shape[0]
    tok2d = tokens.reshape(S * B, 1).astype(jnp.int32)
    pred_pad, hN, cN = decoder_fused(
        tok2d, prepped["embedding"], prepped["w_ih"], prepped["w_hh"],
        prepped["bias"], prepped["fc_w_pad"], prepped["fc_b_pad"], batch=B)
    pred = pred_pad[:, :V].reshape(S, B, V)
    return pred, hN[None], cN[None]


# ----------------------------------------------------------------------------
# Pure-JAX reference (sanity check)
# ----------------------------------------------------------------------------
def decoder_reference(tokens, params):
    emb = jnp.take(params["embedding"], tokens, axis=0)
    H = params["w_hh"].shape[0]
    B = tokens.shape[1]

    def step(carry, x_t):
        h, c = carry
        gates = (x_t @ params["w_ih"] + h @ params["w_hh"]
                 + params["b_ih"][0] + params["b_hh"][0])
        i = jax.nn.sigmoid(gates[:, 0 * H:1 * H])
        f = jax.nn.sigmoid(gates[:, 1 * H:2 * H])
        g = jnp.tanh(gates[:, 2 * H:3 * H])
        o = jax.nn.sigmoid(gates[:, 3 * H:4 * H])
        c_new = f * c + i * g
        h_new = o * jnp.tanh(c_new)
        return (h_new, c_new), h_new

    h0 = jnp.zeros((B, H), jnp.float32)
    c0 = jnp.zeros((B, H), jnp.float32)
    (hN, cN), outs = jax.lax.scan(step, (h0, c0), emb)
    pred = outs @ params["fc_w_t"] + params["fc_b"][0]
    return pred, hN[None], cN[None]


if __name__ == "__main__":
    # Small shapes consistent with the module.
    INPUT_SIZE = 64      # vocab
    EMBED = 16
    HIDDEN = 32
    SEQ = 8
    BATCH = 4

    key = jax.random.PRNGKey(0)
    ks = jax.random.split(key, 8)

    params = {
        "embedding": 0.1 * jax.random.normal(ks[0], (INPUT_SIZE, EMBED), jnp.float32),
        # PyTorch stores weight_ih [4H,E]; we pass the transposed [E,4H] layout.
        "w_ih": 0.1 * jax.random.normal(ks[1], (EMBED, 4 * HIDDEN), jnp.float32),
        "w_hh": 0.1 * jax.random.normal(ks[2], (HIDDEN, 4 * HIDDEN), jnp.float32),
        "b_ih": 0.1 * jax.random.normal(ks[3], (1, 4 * HIDDEN), jnp.float32),
        "b_hh": 0.1 * jax.random.normal(ks[4], (1, 4 * HIDDEN), jnp.float32),
        # fc_out: PyTorch weight [V,H]; we pass transposed [H,V].
        "fc_w_t": 0.1 * jax.random.normal(ks[5], (HIDDEN, INPUT_SIZE), jnp.float32),
        "fc_b": 0.1 * jax.random.normal(ks[6], (1, INPUT_SIZE), jnp.float32),
    }

    tokens = jax.random.randint(ks[7], (SEQ, BATCH), 0, INPUT_SIZE, jnp.int32)

    prepped = prepare_params(params)
    pred, hidden, cell = decoder_forward(tokens, prepped)
    jax.block_until_ready((pred, hidden, cell))

    # Sanity check vs pure-JAX reference.
    pred_r, hidden_r, cell_r = decoder_reference(tokens, params)
    assert pred.shape == (SEQ, BATCH, INPUT_SIZE)
    assert hidden.shape == (1, BATCH, HIDDEN) and cell.shape == (1, BATCH, HIDDEN)
    assert jnp.allclose(pred, pred_r, atol=1e-5)
    assert jnp.allclose(hidden, hidden_r, atol=1e-5)
    assert jnp.allclose(cell, cell_r, atol=1e-5)

    print("KERNEL_OK")
</pallas_src>

<mosaic_0001>
module attributes {stable_mosaic.version = 11 : i64} {
  func.func @_decoder_kernel(%arg0: memref<32x1xi32, #tpu.memory_space<vmem>>, %arg1: memref<64x16xf32, #tpu.memory_space<vmem>>, %arg2: memref<16x128xf32, #tpu.memory_space<vmem>>, %arg3: memref<32x128xf32, #tpu.memory_space<vmem>>, %arg4: memref<1x128xf32, #tpu.memory_space<vmem>>, %arg5: memref<32x128xf32, #tpu.memory_space<vmem>>, %arg6: memref<1x128xf32, #tpu.memory_space<vmem>>, %arg7: memref<32x128xf32, #tpu.memory_space<vmem>>, %arg8: memref<4x32xf32, #tpu.memory_space<vmem>>, %arg9: memref<4x32xf32, #tpu.memory_space<vmem>>) attributes {dimension_semantics = [], scalar_prefetch = 0 : i64, scratch_operands = 0 : i64, tpu.core_type = #tpu.core_type<tc>} {
    %c0 = arith.constant 0 : index
    %c0_0 = arith.constant 0 : index
    %0 = vector.load %arg0[%c0, %c0_0] : memref<32x1xi32, #tpu.memory_space<vmem>>, vector<32x1xi32>
    %1 = tpu.iota {dimensions = array<i32: 1>} : vector<32x64xi32>
    %2 = vector.broadcast %0 : vector<32x1xi32> to vector<32x64xi32>
    %3 = arith.cmpi eq, %2, %1 : vector<32x64xi32>
    %4 = arith.extui %3 : vector<32x64xi1> to vector<32x64xi32>
    %5 = arith.sitofp %4 : vector<32x64xi32> to vector<32x64xf32>
    %c0_1 = arith.constant 0 : index
    %c0_2 = arith.constant 0 : index
    %6 = vector.load %arg1[%c0_1, %c0_2] : memref<64x16xf32, #tpu.memory_space<vmem>>, vector<64x16xf32>
    %cst = arith.constant dense<0.000000e+00> : vector<32x16xf32>
    %7 = tpu.matmul %5, %6, %cst {dimension_numbers = #tpu.dot_dimension_numbers<[1], [0], [0], [1], [0, 0, 1, 1], [], []>} : vector<32x64xf32>, vector<64x16xf32>, vector<32x16xf32> -> vector<32x16xf32>
    %c0_3 = arith.constant 0 : index
    %c0_4 = arith.constant 0 : index
    %8 = vector.load %arg2[%c0_3, %c0_4] : memref<16x128xf32, #tpu.memory_space<vmem>>, vector<16x128xf32>
    %cst_5 = arith.constant dense<0.000000e+00> : vector<32x128xf32>
    %9 = tpu.matmul %7, %8, %cst_5 {dimension_numbers = #tpu.dot_dimension_numbers<[1], [0], [0], [1], [0, 0, 1, 1], [], []>} : vector<32x16xf32>, vector<16x128xf32>, vector<32x128xf32> -> vector<32x128xf32>
    %c0_6 = arith.constant 0 : index
    %c0_7 = arith.constant 0 : index
    %10 = vector.load %arg4[%c0_6, %c0_7] : memref<1x128xf32, #tpu.memory_space<vmem>>, vector<1x128xf32>
    %11 = vector.broadcast %10 : vector<1x128xf32> to vector<32x128xf32>
    %12 = arith.addf %9, %11 : vector<32x128xf32>
    %c0_8 = arith.constant 0 : index
    %c0_9 = arith.constant 0 : index
    %13 = vector.load %arg3[%c0_8, %c0_9] : memref<32x128xf32, #tpu.memory_space<vmem>>, vector<32x128xf32>
    %cst_10 = arith.constant 0.000000e+00 : f32
    %14 = vector.broadcast %cst_10 : f32 to vector<4x32xf32>
    %cst_11 = arith.constant 0.000000e+00 : f32
    %15 = vector.broadcast %cst_11 : f32 to vector<4x32xf32>
    %16 = vector.extract_strided_slice %12 {offsets = [0, 0], sizes = [4, 128], strides = [1, 1]} : vector<32x128xf32> to vector<4x128xf32>
    %cst_12 = arith.constant dense<0.000000e+00> : vector<4x128xf32>
    %17 = tpu.matmul %14, %13, %cst_12 {dimension_numbers = #tpu.dot_dimension_numbers<[1], [0], [0], [1], [0, 0, 1, 1], [], []>} : vector<4x32xf32>, vector<32x128xf32>, vector<4x128xf32> -> vector<4x128xf32>
    %18 = arith.addf %16, %17 : vector<4x128xf32>
    %19 = vector.extract_strided_slice %18 {offsets = [0, 0], sizes = [4, 32], strides = [1, 1]} : vector<4x128xf32> to vector<4x32xf32>
    %20 = arith.negf %19 : vector<4x32xf32>
    %21 = math.exp %20 : vector<4x32xf32>
    %cst_13 = arith.constant 1.000000e+00 : f32
    %22 = vector.broadcast %cst_13 : f32 to vector<4x32xf32>
    %23 = arith.addf %22, %21 : vector<4x32xf32>
    %24 = arith.divf %22, %23 : vector<4x32xf32>
    %25 = vector.extract_strided_slice %18 {offsets = [0, 32], sizes = [4, 32], strides = [1, 1]} : vector<4x128xf32> to vector<4x32xf32>
    %26 = arith.negf %25 : vector<4x32xf32>
    %27 = math.exp %26 : vector<4x32xf32>
    %cst_14 = arith.constant 1.000000e+00 : f32
    %28 = vector.broadcast %cst_14 : f32 to vector<4x32xf32>
    %29 = arith.addf %28, %27 : vector<4x32xf32>
    %30 = arith.divf %28, %29 : vector<4x32xf32>
    %31 = vector.extract_strided_slice %18 {offsets = [0, 64], sizes = [4, 32], strides = [1, 1]} : vector<4x128xf32> to vector<4x32xf32>
    %32 = math.tanh %31 : vector<4x32xf32>
    %33 = vector.extract_strided_slice %18 {offsets = [0, 96], sizes = [4, 32], strides = [1, 1]} : vector<4x128xf32> to vector<4x32xf32>
    %34 = arith.negf %33 : vector<4x32xf32>
    %35 = math.exp %34 : vector<4x32xf32>
    %cst_15 = arith.constant 1.000000e+00 : f32
    %36 = vector.broadcast %cst_15 : f32 to vector<4x32xf32>
    %37 = arith.addf %36, %35 : vector<4x32xf32>
    %38 = arith.divf %36, %37 : vector<4x32xf32>
    %39 = arith.mulf %30, %15 : vector<4x32xf32>
    %40 = arith.mulf %24, %32 : vector<4x32xf32>
    %41 = arith.addf %39, %40 : vector<4x32xf32>
    %42 = math.tanh %41 : vector<4x32xf32>
    %43 = arith.mulf %38, %42 : vector<4x32xf32>
    %44 = vector.extract_strided_slice %12 {offsets = [4, 0], sizes = [4, 128], strides = [1, 1]} : vector<32x128xf32> to vector<4x128xf32>
    %cst_16 = arith.constant dense<0.000000e+00> : vector<4x128xf32>
    %45 = tpu.matmul %43, %13, %cst_16 {dimension_numbers = #tpu.dot_dimension_numbers<[1], [0], [0], [1], [0, 0, 1, 1], [], []>} : vector<4x32xf32>, vector<32x128xf32>, vector<4x128xf32> -> vector<4x128xf32>
    %46 = arith.addf %44, %45 : vector<4x128xf32>
    %47 = vector.extract_strided_slice %46 {offsets = [0, 0], sizes = [4, 32], strides = [1, 1]} : vector<4x128xf32> to vector<4x32xf32>
    %48 = arith.negf %47 : vector<4x32xf32>
    %49 = math.exp %48 : vector<4x32xf32>
    %cst_17 = arith.constant 1.000000e+00 : f32
    %50 = vector.broadcast %cst_17 : f32 to vector<4x32xf32>
    %51 = arith.addf %50, %49 : vector<4x32xf32>
    %52 = arith.divf %50, %51 : vector<4x32xf32>
    %53 = vector.extract_strided_slice %46 {offsets = [0, 32], sizes = [4, 32], strides = [1, 1]} : vector<4x128xf32> to vector<4x32xf32>
    %54 = arith.negf %53 : vector<4x32xf32>
    %55 = math.exp %54 : vector<4x32xf32>
    %cst_18 = arith.constant 1.000000e+00 : f32
    %56 = vector.broadcast %cst_18 : f32 to vector<4x32xf32>
    %57 = arith.addf %56, %55 : vector<4x32xf32>
    %58 = arith.divf %56, %57 : vector<4x32xf32>
    %59 = vector.extract_strided_slice %46 {offsets = [0, 64], sizes = [4, 32], strides = [1, 1]} : vector<4x128xf32> to vector<4x32xf32>
    %60 = math.tanh %59 : vector<4x32xf32>
    %61 = vector.extract_strided_slice %46 {offsets = [0, 96], sizes = [4, 32], strides = [1, 1]} : vector<4x128xf32> to vector<4x32xf32>
    %62 = arith.negf %61 : vector<4x32xf32>
    %63 = math.exp %62 : vector<4x32xf32>
    %cst_19 = arith.constant 1.000000e+00 : f32
    %64 = vector.broadcast %cst_19 : f32 to vector<4x32xf32>
    %65 = arith.addf %64, %63 : vector<4x32xf32>
    %66 = arith.divf %64, %65 : vector<4x32xf32>
    %67 = arith.mulf %58, %41 : vector<4x32xf32>
    %68 = arith.mulf %52, %60 : vector<4x32xf32>
    %69 = arith.addf %67, %68 : vector<4x32xf32>
    %70 = math.tanh %69 : vector<4x32xf32>
    %71 = arith.mulf %66, %70 : vector<4x32xf32>
    %72 = vector.extract_strided_slice %12 {offsets = [8, 0], sizes = [4, 128], strides = [1, 1]} : vector<32x128xf32> to vector<4x128xf32>
    %cst_20 = arith.constant dense<0.000000e+00> : vector<4x128xf32>
    %73 = tpu.matmul %71, %13, %cst_20 {dimension_numbers = #tpu.dot_dimension_numbers<[1], [0], [0], [1], [0, 0, 1, 1], [], []>} : vector<4x32xf32>, vector<32x128xf32>, vector<4x128xf32> -> vector<4x128xf32>
    %74 = arith.addf %72, %73 : vector<4x128xf32>
    %75 = vector.extract_strided_slice %74 {offsets = [0, 0], sizes = [4, 32], strides = [1, 1]} : vector<4x128xf32> to vector<4x32xf32>
    %76 = arith.negf %75 : vector<4x32xf32>
    %77 = math.exp %76 : vector<4x32xf32>
    %cst_21 = arith.constant 1.000000e+00 : f32
    %78 = vector.broadcast %cst_21 : f32 to vector<4x32xf32>
    %79 = arith.addf %78, %77 : vector<4x32xf32>
    %80 = arith.divf %78, %79 : vector<4x32xf32>
    %81 = vector.extract_strided_slice %74 {offsets = [0, 32], sizes = [4, 32], strides = [1, 1]} : vector<4x128xf32> to vector<4x32xf32>
    %82 = arith.negf %81 : vector<4x32xf32>
    %83 = math.exp %82 : vector<4x32xf32>
    %cst_22 = arith.constant 1.000000e+00 : f32
    %84 = vector.broadcast %cst_22 : f32 to vector<4x32xf32>
    %85 = arith.addf %84, %83 : vector<4x32xf32>
    %86 = arith.divf %84, %85 : vector<4x32xf32>
    %87 = vector.extract_strided_slice %74 {offsets = [0, 64], sizes = [4, 32], strides = [1, 1]} : vector<4x128xf32> to vector<4x32xf32>
    %88 = math.tanh %87 : vector<4x32xf32>
    %89 = vector.extract_strided_slice %74 {offsets = [0, 96], sizes = [4, 32], strides = [1, 1]} : vector<4x128xf32> to vector<4x32xf32>
    %90 = arith.negf %89 : vector<4x32xf32>
    %91 = math.exp %90 : vector<4x32xf32>
    %cst_23 = arith.constant 1.000000e+00 : f32
    %92 = vector.broadcast %cst_23 : f32 to vector<4x32xf32>
    %93 = arith.addf %92, %91 : vector<4x32xf32>
    %94 = arith.divf %92, %93 : vector<4x32xf32>
    %95 = arith.mulf %86, %69 : vector<4x32xf32>
    %96 = arith.mulf %80, %88 : vector<4x32xf32>
    %97 = arith.addf %95, %96 : vector<4x32xf32>
    %98 = math.tanh %97 : vector<4x32xf32>
    %99 = arith.mulf %94, %98 : vector<4x32xf32>
    %100 = vector.extract_strided_slice %12 {offsets = [12, 0], sizes = [4, 128], strides = [1, 1]} : vector<32x128xf32> to vector<4x128xf32>
    %cst_24 = arith.constant dense<0.000000e+00> : vector<4x128xf32>
    %101 = tpu.matmul %99, %13, %cst_24 {dimension_numbers = #tpu.dot_dimension_numbers<[1], [0], [0], [1], [0, 0, 1, 1], [], []>} : vector<4x32xf32>, vector<32x128xf32>, vector<4x128xf32> -> vector<4x128xf32>
    %102 = arith.addf %100, %101 : vector<4x128xf32>
    %103 = vector.extract_strided_slice %102 {offsets = [0, 0], sizes = [4, 32], strides = [1, 1]} : vector<4x128xf32> to vector<4x32xf32>
    %104 = arith.negf %103 : vector<4x32xf32>
    %105 = math.exp %104 : vector<4x32xf32>
    %cst_25 = arith.constant 1.000000e+00 : f32
    %106 = vector.broadcast %cst_25 : f32 to vector<4x32xf32>
    %107 = arith.addf %106, %105 : vector<4x32xf32>
    %108 = arith.divf %106, %107 : vector<4x32xf32>
    %109 = vector.extract_strided_slice %102 {offsets = [0, 32], sizes = [4, 32], strides = [1, 1]} : vector<4x128xf32> to vector<4x32xf32>
    %110 = arith.negf %109 : vector<4x32xf32>
    %111 = math.exp %110 : vector<4x32xf32>
    %cst_26 = arith.constant 1.000000e+00 : f32
    %112 = vector.broadcast %cst_26 : f32 to vector<4x32xf32>
    %113 = arith.addf %112, %111 : vector<4x32xf32>
    %114 = arith.divf %112, %113 : vector<4x32xf32>
    %115 = vector.extract_strided_slice %102 {offsets = [0, 64], sizes = [4, 32], strides = [1, 1]} : vector<4x128xf32> to vector<4x32xf32>
    %116 = math.tanh %115 : vector<4x32xf32>
    %117 = vector.extract_strided_slice %102 {offsets = [0, 96], sizes = [4, 32], strides = [1, 1]} : vector<4x128xf32> to vector<4x32xf32>
    %118 = arith.negf %117 : vector<4x32xf32>
    %119 = math.exp %118 : vector<4x32xf32>
    %cst_27 = arith.constant 1.000000e+00 : f32
    %120 = vector.broadcast %cst_27 : f32 to vector<4x32xf32>
    %121 = arith.addf %120, %119 : vector<4x32xf32>
    %122 = arith.divf %120, %121 : vector<4x32xf32>
    %123 = arith.mulf %114, %97 : vector<4x32xf32>
    %124 = arith.mulf %108, %116 : vector<4x32xf32>
    %125 = arith.addf %123, %124 : vector<4x32xf32>
    %126 = math.tanh %125 : vector<4x32xf32>
    %127 = arith.mulf %122, %126 : vector<4x32xf32>
    %128 = vector.extract_strided_slice %12 {offsets = [16, 0], sizes = [4, 128], strides = [1, 1]} : vector<32x128xf32> to vector<4x128xf32>
    %cst_28 = arith.constant dense<0.000000e+00> : vector<4x128xf32>
    %129 = tpu.matmul %127, %13, %cst_28 {dimension_numbers = #tpu.dot_dimension_numbers<[1], [0], [0], [1], [0, 0, 1, 1], [], []>} : vector<4x32xf32>, vector<32x128xf32>, vector<4x128xf32> -> vector<4x128xf32>
    %130 = arith.addf %128, %129 : vector<4x128xf32>
    %131 = vector.extract_strided_slice %130 {offsets = [0, 0], sizes = [4, 32], strides = [1, 1]} : vector<4x128xf32> to vector<4x32xf32>
    %132 = arith.negf %131 : vector<4x32xf32>
    %133 = math.exp %132 : vector<4x32xf32>
    %cst_29 = arith.constant 1.000000e+00 : f32
    %134 = vector.broadcast %cst_29 : f32 to vector<4x32xf32>
    %135 = arith.addf %134, %133 : vector<4x32xf32>
    %136 = arith.divf %134, %135 : vector<4x32xf32>
    %137 = vector.extract_strided_slice %130 {offsets = [0, 32], sizes = [4, 32], strides = [1, 1]} : vector<4x128xf32> to vector<4x32xf32>
    %138 = arith.negf %137 : vector<4x32xf32>
    %139 = math.exp %138 : vector<4x32xf32>
    %cst_30 = arith.constant 1.000000e+00 : f32
    %140 = vector.broadcast %cst_30 : f32 to vector<4x32xf32>
    %141 = arith.addf %140, %139 : vector<4x32xf32>
    %142 = arith.divf %140, %141 : vector<4x32xf32>
    %143 = vector.extract_strided_slice %130 {offsets = [0, 64], sizes = [4, 32], strides = [1, 1]} : vector<4x128xf32> to vector<4x32xf32>
    %144 = math.tanh %143 : vector<4x32xf32>
    %145 = vector.extract_strided_slice %130 {offsets = [0, 96], sizes = [4, 32], strides = [1, 1]} : vector<4x128xf32> to vector<4x32xf32>
    %146 = arith.negf %145 : vector<4x32xf32>
    %147 = math.exp %146 : vector<4x32xf32>
    %cst_31 = arith.constant 1.000000e+00 : f32
    %148 = vector.broadcast %cst_31 : f32 to vector<4x32xf32>
    %149 = arith.addf %148, %147 : vector<4x32xf32>
    %150 = arith.divf %148, %149 : vector<4x32xf32>
    %151 = arith.mulf %142, %125 : vector<4x32xf32>
    %152 = arith.mulf %136, %144 : vector<4x32xf32>
    %153 = arith.addf %151, %152 : vector<4x32xf32>
    %154 = math.tanh %153 : vector<4x32xf32>
    %155 = arith.mulf %150, %154 : vector<4x32xf32>
    %156 = vector.extract_strided_slice %12 {offsets = [20, 0], sizes = [4, 128], strides = [1, 1]} : vector<32x128xf32> to vector<4x128xf32>
    %cst_32 = arith.constant dense<0.000000e+00> : vector<4x128xf32>
    %157 = tpu.matmul %155, %13, %cst_32 {dimension_numbers = #tpu.dot_dimension_numbers<[1], [0], [0], [1], [0, 0, 1, 1], [], []>} : vector<4x32xf32>, vector<32x128xf32>, vector<4x128xf32> -> vector<4x128xf32>
    %158 = arith.addf %156, %157 : vector<4x128xf32>
    %159 = vector.extract_strided_slice %158 {offsets = [0, 0], sizes = [4, 32], strides = [1, 1]} : vector<4x128xf32> to vector<4x32xf32>
    %160 = arith.negf %159 : vector<4x32xf32>
    %161 = math.exp %160 : vector<4x32xf32>
    %cst_33 = arith.constant 1.000000e+00 : f32
    %162 = vector.broadcast %cst_33 : f32 to vector<4x32xf32>
    %163 = arith.addf %162, %161 : vector<4x32xf32>
    %164 = arith.divf %162, %163 : vector<4x32xf32>
    %165 = vector.extract_strided_slice %158 {offsets = [0, 32], sizes = [4, 32], strides = [1, 1]} : vector<4x128xf32> to vector<4x32xf32>
    %166 = arith.negf %165 : vector<4x32xf32>
    %167 = math.exp %166 : vector<4x32xf32>
    %cst_34 = arith.constant 1.000000e+00 : f32
    %168 = vector.broadcast %cst_34 : f32 to vector<4x32xf32>
    %169 = arith.addf %168, %167 : vector<4x32xf32>
    %170 = arith.divf %168, %169 : vector<4x32xf32>
    %171 = vector.extract_strided_slice %158 {offsets = [0, 64], sizes = [4, 32], strides = [1, 1]} : vector<4x128xf32> to vector<4x32xf32>
    %172 = math.tanh %171 : vector<4x32xf32>
    %173 = vector.extract_strided_slice %158 {offsets = [0, 96], sizes = [4, 32], strides = [1, 1]} : vector<4x128xf32> to vector<4x32xf32>
    %174 = arith.negf %173 : vector<4x32xf32>
    %175 = math.exp %174 : vector<4x32xf32>
    %cst_35 = arith.constant 1.000000e+00 : f32
    %176 = vector.broadcast %cst_35 : f32 to vector<4x32xf32>
    %177 = arith.addf %176, %175 : vector<4x32xf32>
    %178 = arith.divf %176, %177 : vector<4x32xf32>
    %179 = arith.mulf %170, %153 : vector<4x32xf32>
    %180 = arith.mulf %164, %172 : vector<4x32xf32>
    %181 = arith.addf %179, %180 : vector<4x32xf32>
    %182 = math.tanh %181 : vector<4x32xf32>
    %183 = arith.mulf %178, %182 : vector<4x32xf32>
    %184 = vector.extract_strided_slice %12 {offsets = [24, 0], sizes = [4, 128], strides = [1, 1]} : vector<32x128xf32> to vector<4x128xf32>
    %cst_36 = arith.constant dense<0.000000e+00> : vector<4x128xf32>
    %185 = tpu.matmul %183, %13, %cst_36 {dimension_numbers = #tpu.dot_dimension_numbers<[1], [0], [0], [1], [0, 0, 1, 1], [], []>} : vector<4x32xf32>, vector<32x128xf32>, vector<4x128xf32> -> vector<4x128xf32>
    %186 = arith.addf %184, %185 : vector<4x128xf32>
    %187 = vector.extract_strided_slice %186 {offsets = [0, 0], sizes = [4, 32], strides = [1, 1]} : vector<4x128xf32> to vector<4x32xf32>
    %188 = arith.negf %187 : vector<4x32xf32>
    %189 = math.exp %188 : vector<4x32xf32>
    %cst_37 = arith.constant 1.000000e+00 : f32
    %190 = vector.broadcast %cst_37 : f32 to vector<4x32xf32>
    %191 = arith.addf %190, %189 : vector<4x32xf32>
    %192 = arith.divf %190, %191 : vector<4x32xf32>
    %193 = vector.extract_strided_slice %186 {offsets = [0, 32], sizes = [4, 32], strides = [1, 1]} : vector<4x128xf32> to vector<4x32xf32>
    %194 = arith.negf %193 : vector<4x32xf32>
    %195 = math.exp %194 : vector<4x32xf32>
    %cst_38 = arith.constant 1.000000e+00 : f32
    %196 = vector.broadcast %cst_38 : f32 to vector<4x32xf32>
    %197 = arith.addf %196, %195 : vector<4x32xf32>
    %198 = arith.divf %196, %197 : vector<4x32xf32>
    %199 = vector.extract_strided_slice %186 {offsets = [0, 64], sizes = [4, 32], strides = [1, 1]} : vector<4x128xf32> to vector<4x32xf32>
    %200 = math.tanh %199 : vector<4x32xf32>
    %201 = vector.extract_strided_slice %186 {offsets = [0, 96], sizes = [4, 32], strides = [1, 1]} : vector<4x128xf32> to vector<4x32xf32>
    %202 = arith.negf %201 : vector<4x32xf32>
    %203 = math.exp %202 : vector<4x32xf32>
    %cst_39 = arith.constant 1.000000e+00 : f32
    %204 = vector.broadcast %cst_39 : f32 to vector<4x32xf32>
    %205 = arith.addf %204, %203 : vector<4x32xf32>
    %206 = arith.divf %204, %205 : vector<4x32xf32>
    %207 = arith.mulf %198, %181 : vector<4x32xf32>
    %208 = arith.mulf %192, %200 : vector<4x32xf32>
    %209 = arith.addf %207, %208 : vector<4x32xf32>
    %210 = math.tanh %209 : vector<4x32xf32>
    %211 = arith.mulf %206, %210 : vector<4x32xf32>
    %212 = vector.extract_strided_slice %12 {offsets = [28, 0], sizes = [4, 128], strides = [1, 1]} : vector<32x128xf32> to vector<4x128xf32>
    %cst_40 = arith.constant dense<0.000000e+00> : vector<4x128xf32>
    %213 = tpu.matmul %211, %13, %cst_40 {dimension_numbers = #tpu.dot_dimension_numbers<[1], [0], [0], [1], [0, 0, 1, 1], [], []>} : vector<4x32xf32>, vector<32x128xf32>, vector<4x128xf32> -> vector<4x128xf32>
    %214 = arith.addf %212, %213 : vector<4x128xf32>
    %215 = vector.extract_strided_slice %214 {offsets = [0, 0], sizes = [4, 32], strides = [1, 1]} : vector<4x128xf32> to vector<4x32xf32>
    %216 = arith.negf %215 : vector<4x32xf32>
    %217 = math.exp %216 : vector<4x32xf32>
    %cst_41 = arith.constant 1.000000e+00 : f32
    %218 = vector.broadcast %cst_41 : f32 to vector<4x32xf32>
    %219 = arith.addf %218, %217 : vector<4x32xf32>
    %220 = arith.divf %218, %219 : vector<4x32xf32>
    %221 = vector.extract_strided_slice %214 {offsets = [0, 32], sizes = [4, 32], strides = [1, 1]} : vector<4x128xf32> to vector<4x32xf32>
    %222 = arith.negf %221 : vector<4x32xf32>
    %223 = math.exp %222 : vector<4x32xf32>
    %cst_42 = arith.constant 1.000000e+00 : f32
    %224 = vector.broadcast %cst_42 : f32 to vector<4x32xf32>
    %225 = arith.addf %224, %223 : vector<4x32xf32>
    %226 = arith.divf %224, %225 : vector<4x32xf32>
    %227 = vector.extract_strided_slice %214 {offsets = [0, 64], sizes = [4, 32], strides = [1, 1]} : vector<4x128xf32> to vector<4x32xf32>
    %228 = math.tanh %227 : vector<4x32xf32>
    %229 = vector.extract_strided_slice %214 {offsets = [0, 96], sizes = [4, 32], strides = [1, 1]} : vector<4x128xf32> to vector<4x32xf32>
    %230 = arith.negf %229 : vector<4x32xf32>
    %231 = math.exp %230 : vector<4x32xf32>
    %cst_43 = arith.constant 1.000000e+00 : f32
    %232 = vector.broadcast %cst_43 : f32 to vector<4x32xf32>
    %233 = arith.addf %232, %231 : vector<4x32xf32>
    %234 = arith.divf %232, %233 : vector<4x32xf32>
    %235 = arith.mulf %226, %209 : vector<4x32xf32>
    %236 = arith.mulf %220, %228 : vector<4x32xf32>
    %237 = arith.addf %235, %236 : vector<4x32xf32>
    %238 = math.tanh %237 : vector<4x32xf32>
    %239 = arith.mulf %234, %238 : vector<4x32xf32>
    %240 = tpu.concatenate %43, %71, %99, %127, %155, %183, %211, %239 in 0 : vector<4x32xf32>, vector<4x32xf32>, vector<4x32xf32>, vector<4x32xf32>, vector<4x32xf32>, vector<4x32xf32>, vector<4x32xf32>, vector<4x32xf32> -> vector<32x32xf32>
    %c0_44 = arith.constant 0 : index
    %c0_45 = arith.constant 0 : index
    %241 = vector.load %arg5[%c0_44, %c0_45] : memref<32x128xf32, #tpu.memory_space<vmem>>, vector<32x128xf32>
    %cst_46 = arith.constant dense<0.000000e+00> : vector<32x128xf32>
    %242 = tpu.matmul %240, %241, %cst_46 {dimension_numbers = #tpu.dot_dimension_numbers<[1], [0], [0], [1], [0, 0, 1, 1], [], []>} : vector<32x32xf32>, vector<32x128xf32>, vector<32x128xf32> -> vector<32x128xf32>
    %c0_47 = arith.constant 0 : index
    %c0_48 = arith.constant 0 : index
    %243 = vector.load %arg6[%c0_47, %c0_48] : memref<1x128xf32, #tpu.memory_space<vmem>>, vector<1x128xf32>
    %244 = vector.broadcast %243 : vector<1x128xf32> to vector<32x128xf32>
    %245 = arith.addf %242, %244 : vector<32x128xf32>
    %c0_49 = arith.constant 0 : index
    %c0_50 = arith.constant 0 : index
    %246 = vector.load %arg7[%c0_49, %c0_50] : memref<32x128xf32, #tpu.memory_space<vmem>>, vector<32x128xf32>
    tpu.vector_store %arg7[%c0_49, %c0_50], %245 {strides = array<i32>} : memref<32x128xf32, #tpu.memory_space<vmem>>, vector<32x128xf32>,
    %c0_51 = arith.constant 0 : index
    %c0_52 = arith.constant 0 : index
    %247 = vector.load %arg8[%c0_51, %c0_52] : memref<4x32xf32, #tpu.memory_space<vmem>>, vector<4x32xf32>
    tpu.vector_store %arg8[%c0_51, %c0_52], %239 {strides = array<i32>} : memref<4x32xf32, #tpu.memory_space<vmem>>, vector<4x32xf32>,
    %c0_53 = arith.constant 0 : index
    %c0_54 = arith.constant 0 : index
    %248 = vector.load %arg9[%c0_53, %c0_54] : memref<4x32xf32, #tpu.memory_space<vmem>>, vector<4x32xf32>
    tpu.vector_store %arg9[%c0_53, %c0_54], %237 {strides = array<i32>} : memref<4x32xf32, #tpu.memory_space<vmem>>, vector<4x32xf32>,
    return
  }
}

</mosaic_0001>

<bundles_post_ra>
// kernel: decoder_forward.1
= control target key start
LH: loop header
LB: loop body
LE: loop exit
PB: predicated region body
PF: predicated region fallthrough
CT: control target
= control target key end

     0   :  { %15 = vsyncpa [#allocation3], 0  ;;  %v1017_v2 = vmov 0   ;;  %s1300_s0 = inlined_call_operand.vmem [shape: s32[32,1], index: 0, kind: input, shape index: {}]   ;;  %s1301_s1 = inlined_call_operand.vmem [shape: f32[64,16], index: 1, kind: input, shape index: {}]   ;;  %s1302_s2 = inlined_call_operand.vmem [shape: f32[16,128], index: 2, kind: input, shape index: {}]   ;;  %s1303_s3 = inlined_call_operand.vmem [shape: f32[32,128], index: 3, kind: input, shape index: {}]   ;;  %s1304_s4 = inlined_call_operand.vmem [shape: f32[1,128], index: 4, kind: input, shape index: {}]   ;;  %s1305_s5 = inlined_call_operand.vmem [shape: f32[32,128], index: 5, kind: input, shape index: {}]   ;;  %s1306_s6 = inlined_call_operand.vmem [shape: f32[1,128], index: 6, kind: input, shape index: {}]   ;;  %s1307_s7 = inlined_call_operand.hbm [shape: f32[32,128], index: 7, kind: output, shape index: {0}]   ;;  %s1308_s8 = inlined_call_operand.hbm [shape: f32[4,32], index: 8, kind: output, shape index: {1}]   ;;  %s1309_s9 = inlined_call_operand.hbm [shape: f32[4,32], index: 9, kind: output, shape index: {2}]  }
   0x1   :  { %v31_v0 = vld [vmem:[%s1300_s0] sm:$0xff]  ;;  %v33_v1 = vld [vmem:[%s1300_s0 + $0x10] sm:$0xff]  ;;  %873 = vset.pattern.permute.xlu0 %v1017_v2  ;;  %874 = vset.pattern.permute.xlu1 %v1017_v2  ;;  %v68_v3 = vld [vmem:[%s1301_s1 + $0x38] sm:$0xff] }
   0x2   :  { %38 = vperm.xlu0 %873, %v31_v0   ;;  %44 = vperm.xlu1 %874, %v33_v1   ;;  %v67_v4 = vld [vmem:[%s1301_s1 + $0x30] sm:$0xff]  ;;  %v66_v5 = vld [vmem:[%s1301_s1 + $0x28] sm:$0xff] }
   0x3   :  { %90 = vmatpush.msra.mxu0 %v68_v3 }
   0x4   :  { %16 = vsyncpa [#allocation5], 0  ;;  %v65_v6 = vld [vmem:[%s1301_s1 + $0x20] sm:$0xff]  ;;  %v32_v7 = vld [vmem:[%s1300_s0 + $0x8] sm:$0xff]  ;;  %v35_v13 = vlaneseq  ;;  %vm69_vm0 = vcmask 523264   ;;  %v1018_v17 = vmov 0.0  }
   0x5   :  { %91 = vmatpush.msra.mxu0 %v67_v4  ;;  %v34_v8 = vld [vmem:[%s1300_s0 + $0x18] sm:$0xff]  ;;  %v63_v10 = vld [vmem:[%s1301_s1 + $0x10] sm:$0xff]  ;;  %v62_v11 = vld [vmem:[%s1301_s1 + $0x8] sm:$0xff]  ;;  %vm117_vm5 = vcmask 130048   ;;  %s1019_s22 = smov 64   ;;  %vm163_vm10 = vcmask 261120  }
   0x6   :  { %v64_v9 = vld [vmem:[%s1301_s1 + $0x18] sm:$0xff]  ;;  %v61_v12 = vld [vmem:[%s1301_s1] sm:$0xff]  ;;  %v112_v14 = vld [vmem:[%s1302_s2 + $0x8] sm:$0xff]  ;;  %v36_v15 = vand.u32 127, %v35_v13  ;;  %s1021_s10 = smov 96   ;;  %s799_s13 = sshll.u32 %s1308_s8, 4  ;;  %s800_s13 = int_to_ptr.hbm [resolvable:$true] %s799_s13 }
   0x7   :  { %92 = vmatpush.msra.mxu0 %v66_v5  ;;  %144 = vmatpush.msra.mxu1 %v112_v14  ;;  %v111_v25 = vld [vmem:[%s1302_s2] sm:$0xff]  ;;  %v1126_v26 = vld [vmem:[%s1303_s3 + $0x18] sm:$0xff]  ;;  %v1131_v27 = vld [vmem:[%s1303_s3 + $0x10] sm:$0xff]  ;;  %s1023_s14 = smov [#allocation6]   ;;  %s810_s2 = sshll.u32 %s1309_s9, 4  ;;  %s811_s2 = int_to_ptr.hbm [resolvable:$true] %s810_s2 }
   0x8   :  { %859 = vmatpush.msra.mxu2 %v112_v14  ;;  %860 = vmatpush.msra.mxu3 %v112_v14  ;;  %v1140_v28 = vld [vmem:[%s1303_s3 + $0x8] sm:$0xff]  ;;  %v1145_v29 = vld [vmem:[%s1303_s3] sm:$0xff]  ;;  %s808_s15 = sshll.u32 %s1023_s14, 4  ;;  %s1024_s18 = smov [#allocation2]   ;;  %s809_s15 = int_to_ptr.vmem [resolvable:$true] %s808_s15 }
   0x9   :  { %93 = vmatpush.msra.mxu0 %v65_v6  ;;  %145 = vmatpush.msra.mxu1 %v111_v25  ;;  %v1166_v34 = vld [vmem:[%s1304_s4] ss:$0 sm:$0xff]  ;;  %s1020_s4 = smov 32   ;;  %s783_s8 = sshll.u32 %s1024_s18, 4  ;;  %s784_s8 = int_to_ptr.vmem [resolvable:$true] %s783_s8 }
   0xa   :  { %41 = vperm.xlu0 %873, %v32_v7   ;;  %47 = vperm.xlu1 %874, %v34_v8   ;;  %s785_s3 = sshll.u32 %s1307_s7, 4  ;;  %s1025_s9 = smov 128   ;;  %s786_s3 = int_to_ptr.hbm [resolvable:$true] %s785_s3 }
   0xb   :  { %94 = vmatpush.msra.mxu0 %v64_v9  ;;  %861 = vmatpush.msra.mxu2 %v111_v25  ;;  %s1026_s21 = smov 8  }
   0xc   :  { %862 = vmatpush.msra.mxu3 %v111_v25 }
   0xd   :  { %95 = vmatpush.msra.mxu0 %v63_v10  ;;  %179 = vmatpush.msrb.mxu2 %v1126_v26 }
   0xe   :  { %242 = vmatpush.msrb.mxu3 %v1126_v26 }
   0xf   :  { %96 = vmatpush.msra.mxu0 %v62_v11  ;;  %180 = vmatpush.msrb.mxu2 %v1131_v27 }
  0x10   :  { %243 = vmatpush.msrb.mxu3 %v1131_v27 }
  0x11   :  { %97 = vmatpush.msra.mxu0 %v61_v12  ;;  %181 = vmatpush.msrb.mxu2 %v1140_v28 }
  0x12   :  { %244 = vmatpush.msrb.mxu3 %v1140_v28 }
  0x13   :  { %182 = vmatpush.msrb.mxu2 %v1145_v29 }
  0x14   :  { %245 = vmatpush.msrb.mxu3 %v1145_v29 }
  0x74   :  { %v39_v16 = vpop.permute.xlu0 %38  ;;  %v45_v20 = vpop.permute.xlu1 %44 }
  0x75   :  { %vm49_vm1 = vcmp.eq.s32.totalorder %v39_v16, %v36_v15  ;;  %vm51_vm3 = vcmp.eq.s32.totalorder %v45_v20, %v36_v15 }
  0x76   :  { %v828_v18 = vsel %vm49_vm1, 1.0, %v1018_v17  ;;  %v830_v22 = vsel %vm51_vm3, 1.0, %v1018_v17 }
  0x77   :  { %832 = vmatmul.msk.f32.vlgmr.msra.gmra.mxu0 %vm69_vm0, %v828_v18 }
  0x7c   :  { %v42_v19 = vpop.permute.xlu0 %41  ;;  %v48_v23 = vpop.permute.xlu1 %47 }
  0x7d   :  { %vm50_vm2 = vcmp.eq.s32.totalorder %v42_v19, %v36_v15  ;;  %vm52_vm4 = vcmp.eq.s32.totalorder %v48_v23, %v36_v15 }
  0x7e   :  { %v829_v21 = vsel %vm50_vm2, 1.0, %v1018_v17  ;;  %v831_v24 = vsel %vm52_vm4, 1.0, %v1018_v17 }
  0x7f   :  { %833 = vmatmul.msk.f32.gmra.mxu0 %vm69_vm0, %v829_v21 }
  0x87   :  { %834 = vmatmul.msk.f32.gmra.mxu0 %vm69_vm0, %v830_v22 }
  0x8f   :  { %835 = vmatmul.msk.f32.gmra.mxu0 %vm69_vm0, %v831_v24 }
  0xf4   :  { %v99_v30 = vpop.f32.mrf.mxu0 }
  0xf5   :  { %836 = vmatmul.msk.f32.vlgmr.msra.gmra.mxu1 %vm117_vm5, %v99_v30 }
  0xfc   :  { %v102_v31 = vpop.f32.mrf.mxu0 }
  0xfd   :  { %837 = vmatmul.msk.f32.vlgmr.msra.gmra.mxu2 %vm117_vm5, %v102_v31 }
  0xfe   :  { %312 = vmatpush.msra.mxu2 %v1126_v26 }
 0x100   :  { %313 = vmatpush.msra.mxu2 %v1131_v27 }
 0x102   :  { %314 = vmatpush.msra.mxu2 %v1140_v28 }
 0x104   :  { %v105_v32 = vpop.f32.mrf.mxu0  ;;  %315 = vmatpush.msra.mxu2 %v1145_v29 }
 0x105   :  { %838 = vmatmul.msk.f32.gmra.mxu2 %vm117_vm5, %v105_v32 }
 0x10c   :  { %v108_v33 = vpop.f32.mrf.mxu0 }
 0x10d   :  { %839 = vmatmul.msk.f32.vlgmr.msra.gmra.mxu3 %vm117_vm5, %v108_v33  ;;  %183 = vmatmul.f32.vlgmr.msrb.gmra.mxu2 %v1018_v17 }
 0x10e   :  { %378 = vmatpush.msra.mxu3 %v1126_v26  ;;  %448 = vmatpush.msrb.mxu2 %v1126_v26 }
 0x110   :  { %379 = vmatpush.msra.mxu3 %v1131_v27  ;;  %449 = vmatpush.msrb.mxu2 %v1131_v27 }
 0x112   :  { %380 = vmatpush.msra.mxu3 %v1140_v28  ;;  %450 = vmatpush.msrb.mxu2 %v1140_v28 }
 0x114   :  { %381 = vmatpush.msra.mxu3 %v1145_v29  ;;  %451 = vmatpush.msrb.mxu2 %v1145_v29 }
 0x172   :  { %v147_v39 = vpop.f32.mrf.mxu1 }
 0x173   :  { %v148_v40 = vadd.f32 %v1166_v34, %v147_v39 }
 0x180   :  { %v150_v35 = vpop.f32.mrf.mxu2 }
 0x181   :  { %v1169_v36 = vadd.f32 %v1166_v34, %v150_v35 }
 0x188   :  { %v153_v37 = vpop.f32.mrf.mxu2 }
 0x189   :  { %v1172_v38 = vadd.f32 %v1166_v34, %v153_v37 }
 0x190   :  { %v184_v41 = vpop.f32.mrf.mxu2  ;;  %v1187_v2 = vpop.f32.mrf.mxu3 }
 0x191   :  { %v187_v42 = vadd.f32 %v184_v41, %v148_v40 }
 0x193   :  { %877 = vtanh.f32 %v187_v42  ;;  %v840_v44 = vmul.f32 -1.442695, %v187_v42 }
 0x195   :  { %879 = vpow2.f32 %v840_v44 }
 0x199   :  { %v878_v43 = vpop.eup %877 }
 0x19a   :  { %210 = vrot.lane.b32.xlu2 %v878_v43, %s1019_s22 }
 0x19b   :  { %v880_v45 = vpop.eup %879 }
 0x19c   :  { %v191_v46 = vadd.f32 1.0, %v880_v45 }
 0x19e   :  { %881 = vrcp.f32 %v191_v46  ;;  %v203_v52 = vand.u32 2147483648, %v191_v46  ;;  %vm197_vm7 = vweird.f32 %v191_v46  ;;  %v201_v53 = vand.u32 2147483647, %v191_v46 }
 0x1a0   :  { %v204_v55 = vor.u32 1.1754944e-38, %v203_v52  ;;  %vm202_vm9 = vcmp.eq.f32.partialorder %v201_v53, 8.507059e+37 }
 0x1a4   :  { %v882_v47 = vpop.eup %881 }
 0x1a5   :  { %v193_v48 = vmul.f32 %v882_v47, %v191_v46  ;;  %vm198_vm6 = vweird.f32 %v882_v47 }
 0x1a6   :  { %vm199_vm8 = vmor %vm197_vm7, %vm198_vm6 }
 0x1a7   :  { %v194_v49 = vsub.f32 1.0, %v193_v48 }
 0x1a9   :  { %v195_v50 = vmul.f32 %v882_v47, %v194_v49 }
 0x1ab   :  { %v196_v51 = vadd.f32 %v882_v47, %v195_v50 }
 0x1ad   :  { %v200_v54 = vsel %vm199_vm8, %v882_v47, %v196_v51 }
 0x1ae   :  { %v205_v57 = vsel %vm202_vm9, %v204_v55, %v200_v54 }
 0x1af   :  { %v208_v59 = vmul.f32 0.0, %v205_v57 }
 0x1f4   :  { %v211_v56 = vpop.permute.xlu2 %210 }
 0x1f5   :  { %v213_v58 = vmul.f32 %v211_v56, %v205_v57 }
 0x1f7   :  { %215 = vrot.lane.b32.xlu2 %v213_v58, %s1020_s4 }
 0x251   :  { %v216_v60 = vpop.permute.xlu2 %215 }
 0x252   :  { %v218_v61 = vadd.f32 %v216_v60, %v208_v59 }
 0x254   :  { %883 = vtanh.f32 %v218_v61  ;;  %v275_v22 = vrot.slane %v218_v61, 4 }
 0x25a   :  { %v884_v62 = vpop.eup %883 }
 0x25b   :  { %221 = vrot.lane.b32.xlu0 %v884_v62, %s1019_s22 }
 0x2cd   :  { %v222_v63 = vpop.permute.xlu0 %221 }
 0x2ce   :  { %v1178_v0 = vmul.f32 %v222_v63, %v205_v57 }
 0x2d0   :  { %226 = vrot.lane.b32.xlu1 %v1178_v0, %s1020_s4 }
 0x342   :  { %v227_v1 = vpop.permute.xlu1 %226 }
 0x343   :  { %841 = vmatmul.msk.f32.vlgmr.msrb.gmra.mxu3 %vm163_vm10, %v227_v1 }
 0x344   :  { %514 = vmatpush.msrb.mxu3 %v1126_v26 }
 0x346   :  { %515 = vmatpush.msrb.mxu3 %v1131_v27 }
 0x348   :  { %516 = vmatpush.msrb.mxu3 %v1140_v28 }
 0x34a   :  { %517 = vmatpush.msrb.mxu3 %v1145_v29 }
 0x3c6   :  { %v247_v3 = vpop.f32.mrf.mxu3 }
 0x3c7   :  { %v251_v4 = vrot.slane %v247_v3, 4 }
 0x3c9   :  { %v253_v5 = vadd.f32 %v251_v4, %v148_v40 }
 0x3cb   :  { %885 = vtanh.f32 %v253_v5  ;;  %v842_v7 = vmul.f32 -1.442695, %v253_v5 }
 0x3cd   :  { %887 = vpow2.f32 %v842_v7 }
 0x3d1   :  { %v886_v6 = vpop.eup %885 }
 0x3d2   :  { %279 = vrot.lane.b32.xlu2 %v886_v6, %s1019_s22 }
 0x3d3   :  { %v888_v8 = vpop.eup %887 }
 0x3d4   :  { %v257_v9 = vadd.f32 1.0, %v888_v8 }
 0x3d6   :  { %889 = vrcp.f32 %v257_v9  ;;  %v269_v15 = vand.u32 2147483648, %v257_v9  ;;  %vm263_vm12 = vweird.f32 %v257_v9  ;;  %v267_v16 = vand.u32 2147483647, %v257_v9 }
 0x3d8   :  { %v270_v18 = vor.u32 1.1754944e-38, %v269_v15  ;;  %vm268_vm14 = vcmp.eq.f32.partialorder %v267_v16, 8.507059e+37 }
 0x3dc   :  { %v890_v10 = vpop.eup %889 }
 0x3dd   :  { %v259_v11 = vmul.f32 %v890_v10, %v257_v9  ;;  %vm264_vm11 = vweird.f32 %v890_v10 }
 0x3de   :  { %vm265_vm13 = vmor %vm263_vm12, %vm264_vm11 }
 0x3df   :  { %v260_v12 = vsub.f32 1.0, %v259_v11 }
 0x3e1   :  { %v261_v13 = vmul.f32 %v890_v10, %v260_v12 }
 0x3e3   :  { %v262_v14 = vadd.f32 %v890_v10, %v261_v13 }
 0x3e5   :  { %v266_v17 = vsel %vm265_vm13, %v890_v10, %v262_v14 }
 0x3e6   :  { %v271_v20 = vsel %vm268_vm14, %v270_v18, %v266_v17 }
 0x3e7   :  { %v277_v23 = vmul.f32 %v275_v22, %v271_v20 }
 0x42c   :  { %v280_v19 = vpop.permute.xlu2 %279 }
 0x42d   :  { %v282_v21 = vmul.f32 %v280_v19, %v271_v20 }
 0x42f   :  { %284 = vrot.lane.b32.xlu0 %v282_v21, %s1020_s4 }
 0x4a1   :  { %v285_v24 = vpop.permute.xlu0 %284 }
 0x4a2   :  { %v287_v25 = vadd.f32 %v285_v24, %v277_v23 }
 0x4a4   :  { %891 = vtanh.f32 %v287_v25  ;;  %v342_v56 = vrot.slane %v287_v25, 4 }
 0x4aa   :  { %v892_v30 = vpop.eup %891 }
 0x4ab   :  { %290 = vrot.lane.b32.xlu1 %v892_v30, %s1019_s22 }
 0x51d   :  { %v291_v31 = vpop.permute.xlu1 %290 }
 0x51e   :  { %v1192_v32 = vmul.f32 %v291_v31, %v271_v20 }
 0x520   :  { %v295_v33 = vrot.slane %v1192_v32, 4 }
 0x522   :  { %296 = vrot.lane.b32.xlu2 %v295_v33, %s1020_s4 }
 0x57c   :  { %v297_v35 = vpop.permute.xlu2 %296 }
 0x57d   :  { %843 = vmatmul.msk.f32.vlgmr.msra.gmra.mxu2 %vm163_vm10, %v297_v35 }
 0x57e   :  { %584 = vmatpush.msra.mxu2 %v1126_v26 }
 0x580   :  { %585 = vmatpush.msra.mxu2 %v1131_v27 }
 0x582   :  { %586 = vmatpush.msra.mxu2 %v1140_v28 }
 0x584   :  { %587 = vmatpush.msra.mxu2 %v1145_v29 }
 0x600   :  { %v317_v37 = vpop.f32.mrf.mxu2 }
 0x601   :  { %v320_v39 = vadd.f32 %v317_v37, %v1169_v36 }
 0x603   :  { %893 = vtanh.f32 %v320_v39  ;;  %v844_v41 = vmul.f32 -1.442695, %v320_v39 }
 0x605   :  { %895 = vpow2.f32 %v844_v41 }
 0x609   :  { %v894_v40 = vpop.eup %893 }
 0x60a   :  { %346 = vrot.lane.b32.xlu0 %v894_v40, %s1019_s22 }
 0x60b   :  { %v896_v42 = vpop.eup %895 }
 0x60c   :  { %v324_v43 = vadd.f32 1.0, %v896_v42 }
 0x60e   :  { %897 = vrcp.f32 %v324_v43  ;;  %v336_v49 = vand.u32 2147483648, %v324_v43  ;;  %vm330_vm0 = vweird.f32 %v324_v43  ;;  %v334_v50 = vand.u32 2147483647, %v324_v43 }
 0x610   :  { %v337_v52 = vor.u32 1.1754944e-38, %v336_v49  ;;  %vm335_vm2 = vcmp.eq.f32.partialorder %v334_v50, 8.507059e+37 }
 0x614   :  { %v898_v44 = vpop.eup %897 }
 0x615   :  { %v326_v45 = vmul.f32 %v898_v44, %v324_v43  ;;  %vm331_vm15 = vweird.f32 %v898_v44 }
 0x616   :  { %vm332_vm1 = vmor %vm330_vm0, %vm331_vm15 }
 0x617   :  { %v327_v46 = vsub.f32 1.0, %v326_v45 }
 0x619   :  { %v328_v47 = vmul.f32 %v898_v44, %v327_v46 }
 0x61b   :  { %v329_v48 = vadd.f32 %v898_v44, %v328_v47 }
 0x61d   :  { %v333_v51 = vsel %vm332_vm1, %v898_v44, %v329_v48 }
 0x61e   :  { %v338_v54 = vsel %vm335_vm2, %v337_v52, %v333_v51 }
 0x61f   :  { %v344_v57 = vmul.f32 %v342_v56, %v338_v54 }
 0x67c   :  { %v347_v53 = vpop.permute.xlu0 %346 }
 0x67d   :  { %v349_v55 = vmul.f32 %v347_v53, %v338_v54 }
 0x67f   :  { %351 = vrot.lane.b32.xlu1 %v349_v55, %s1020_s4 }
 0x6f1   :  { %v352_v58 = vpop.permute.xlu1 %351 }
 0x6f2   :  { %v354_v59 = vadd.f32 %v352_v58, %v344_v57 }
 0x6f4   :  { %899 = vtanh.f32 %v354_v59  ;;  %v411_v16 = vrot.slane %v354_v59, 4 }
 0x6fa   :  { %v900_v60 = vpop.eup %899 }
 0x6fb   :  { %357 = vrot.lane.b32.xlu2 %v900_v60, %s1019_s22 }
 0x755   :  { %v358_v61 = vpop.permute.xlu2 %357 }
 0x756   :  { %v1205_v62 = vmul.f32 %v358_v61, %v338_v54 }
 0x758   :  { %362 = vrot.lane.b32.xlu0 %v1205_v62, %s1020_s4 }
 0x7ca   :  { %v363_v63 = vpop.permute.xlu0 %362 }
 0x7cb   :  { %845 = vmatmul.msk.f32.vlgmr.msra.gmra.mxu3 %vm163_vm10, %v363_v63 }
 0x7cc   :  { %650 = vmatpush.msra.mxu3 %v1126_v26 }
 0x7ce   :  { %651 = vmatpush.msra.mxu3 %v1131_v27 }
 0x7d0   :  { %652 = vmatpush.msra.mxu3 %v1140_v28 }
 0x7d2   :  { %653 = vmatpush.msra.mxu3 %v1145_v29 }
 0x84e   :  { %v383_v1 = vpop.f32.mrf.mxu3 }
 0x84f   :  { %v387_v3 = vrot.slane %v383_v1, 4 }
 0x851   :  { %v389_v4 = vadd.f32 %v387_v3, %v1169_v36 }
 0x853   :  { %901 = vtanh.f32 %v389_v4  ;;  %v846_v6 = vmul.f32 -1.442695, %v389_v4 }
 0x855   :  { %903 = vpow2.f32 %v846_v6 }
 0x859   :  { %v902_v5 = vpop.eup %901 }
 0x85a   :  { %415 = vrot.lane.b32.xlu1 %v902_v5, %s1019_s22 }
 0x85b   :  { %v904_v7 = vpop.eup %903 }
 0x85c   :  { %v393_v8 = vadd.f32 1.0, %v904_v7 }
 0x85e   :  { %905 = vrcp.f32 %v393_v8  ;;  %v405_v29 = vand.u32 2147483648, %v393_v8  ;;  %vm399_vm4 = vweird.f32 %v393_v8  ;;  %v403_v11 = vand.u32 2147483647, %v393_v8 }
 0x860   :  { %v406_v12 = vor.u32 1.1754944e-38, %v405_v29  ;;  %vm404_vm6 = vcmp.eq.f32.partialorder %v403_v11, 8.507059e+37 }
 0x864   :  { %v906_v26 = vpop.eup %905 }
 0x865   :  { %v395_v9 = vmul.f32 %v906_v26, %v393_v8  ;;  %vm400_vm3 = vweird.f32 %v906_v26 }
 0x866   :  { %vm401_vm5 = vmor %vm399_vm4, %vm400_vm3  ;;  %vm702_vm4 = vcmask 1043456  }
 0x867   :  { %v396_v27 = vsub.f32 1.0, %v395_v9 }
 0x869   :  { %v397_v10 = vmul.f32 %v906_v26, %v396_v27 }
 0x86b   :  { %v398_v28 = vadd.f32 %v906_v26, %v397_v10 }
 0x86d   :  { %v402_v36 = vsel %vm401_vm5, %v906_v26, %v398_v28 }
 0x86e   :  { %v407_v14 = vsel %vm404_vm6, %v406_v12, %v402_v36 }
 0x86f   :  { %v413_v17 = vmul.f32 %v411_v16, %v407_v14 }
 0x8cc   :  { %v416_v13 = vpop.permute.xlu1 %415 }
 0x8cd   :  { %v418_v15 = vmul.f32 %v416_v13, %v407_v14 }
 0x8cf   :  { %420 = vrot.lane.b32.xlu2 %v418_v15, %s1020_s4 }
 0x929   :  { %v421_v18 = vpop.permute.xlu2 %420 }
 0x92a   :  { %v423_v19 = vadd.f32 %v421_v18, %v413_v17 }
 0x92c   :  { %907 = vtanh.f32 %v423_v19  ;;  %v478_v51 = vrot.slane %v423_v19, 4 }
 0x932   :  { %v908_v20 = vpop.eup %907 }
 0x933   :  { %426 = vrot.lane.b32.xlu0 %v908_v20, %s1019_s22  ;;  %v157_v20 = vadd.f32 %v1166_v34, %v1187_v2 }
 0x9a5   :  { %v427_v21 = vpop.permute.xlu0 %426 }
 0x9a6   :  { %v1218_v22 = vmul.f32 %v427_v21, %v407_v14 }
 0x9a8   :  { %v431_v23 = vrot.slane %v1218_v22, 4 }
 0x9aa   :  { %432 = vrot.lane.b32.xlu1 %v431_v23, %s1020_s4 }
 0xa1c   :  { %v433_v24 = vpop.permute.xlu1 %432 }
 0xa1d   :  { %847 = vmatmul.msk.f32.vlgmr.msrb.gmra.mxu2 %vm163_vm10, %v433_v24 }
 0xaa0   :  { %v453_v25 = vpop.f32.mrf.mxu2 }
 0xaa1   :  { %v456_v30 = vadd.f32 %v453_v25, %v1172_v38 }
 0xaa3   :  { %909 = vtanh.f32 %v456_v30  ;;  %v848_v33 = vmul.f32 -1.442695, %v456_v30 }
 0xaa5   :  { %911 = vpow2.f32 %v848_v33 }
 0xaa9   :  { %v910_v31 = vpop.eup %909 }
 0xaaa   :  { %482 = vrot.lane.b32.xlu2 %v910_v31, %s1019_s22 }
 0xaab   :  { %v912_v35 = vpop.eup %911 }
 0xaac   :  { %v460_v37 = vadd.f32 1.0, %v912_v35 }
 0xaae   :  { %913 = vrcp.f32 %v460_v37  ;;  %v472_v44 = vand.u32 2147483648, %v460_v37  ;;  %vm466_vm8 = vweird.f32 %v460_v37  ;;  %v470_v45 = vand.u32 2147483647, %v460_v37 }
 0xab0   :  { %v473_v47 = vor.u32 1.1754944e-38, %v472_v44  ;;  %vm471_vm11 = vcmp.eq.f32.partialorder %v470_v45, 8.507059e+37 }
 0xab4   :  { %v914_v39 = vpop.eup %913 }
 0xab5   :  { %v462_v40 = vmul.f32 %v914_v39, %v460_v37  ;;  %vm467_vm7 = vweird.f32 %v914_v39 }
 0xab6   :  { %vm468_vm9 = vmor %vm466_vm8, %vm467_vm7 }
 0xab7   :  { %v463_v41 = vsub.f32 1.0, %v462_v40 }
 0xab9   :  { %v464_v42 = vmul.f32 %v914_v39, %v463_v41 }
 0xabb   :  { %v465_v43 = vadd.f32 %v914_v39, %v464_v42 }
 0xabd   :  { %v469_v46 = vsel %vm468_vm9, %v914_v39, %v465_v43  ;;  %vm772_vm9 = vcmask 261124  }
 0xabe   :  { %v474_v49 = vsel %vm471_vm11, %v473_v47, %v469_v46 }
 0xabf   :  { %v480_v52 = vmul.f32 %v478_v51, %v474_v49 }
 0xb04   :  { %v483_v48 = vpop.permute.xlu2 %482 }
 0xb05   :  { %v485_v50 = vmul.f32 %v483_v48, %v474_v49 }
 0xb07   :  { %487 = vrot.lane.b32.xlu0 %v485_v50, %s1020_s4 }
 0xb79   :  { %v488_v53 = vpop.permute.xlu0 %487 }
 0xb7a   :  { %v490_v54 = vadd.f32 %v488_v53, %v480_v52 }
 0xb7c   :  { %915 = vtanh.f32 %v490_v54  ;;  %v547_v36 = vrot.slane %v490_v54, 4 }
 0xb82   :  { %v916_v55 = vpop.eup %915 }
 0xb83   :  { %493 = vrot.lane.b32.xlu1 %v916_v55, %s1019_s22 }
 0xbf5   :  { %v494_v56 = vpop.permute.xlu1 %493 }
 0xbf6   :  { %v1227_v57 = vmul.f32 %v494_v56, %v474_v49 }
 0xbf8   :  { %498 = vrot.lane.b32.xlu2 %v1227_v57, %s1020_s4 }
 0xc52   :  { %v499_v58 = vpop.permute.xlu2 %498 }
 0xc53   :  { %849 = vmatmul.msk.f32.vlgmr.msrb.gmra.mxu3 %vm163_vm10, %v499_v58 }
 0xcd6   :  { %v519_v59 = vpop.f32.mrf.mxu3 }
 0xcd7   :  { %v523_v60 = vrot.slane %v519_v59, 4  ;;  %v703_v59 = vsel %vm702_vm4, %v1178_v0, %v1192_v32  ;;  %v707_v0 = vld [vmem:[%s1305_s5] sm:$0xff] }
 0xcd9   :  { %v525_v61 = vadd.f32 %v523_v60, %v1172_v38 }
 0xcdb   :  { %917 = vtanh.f32 %v525_v61  ;;  %v850_v1 = vmul.f32 -1.442695, %v525_v61 }
 0xcdd   :  { %919 = vpow2.f32 %v850_v1  ;;  %v710_v1 = vld [vmem:[%s1305_s5 + $0x18] sm:$0xff] }
 0xcde   :  { %747 = vmatpush.msrb.mxu1 %v710_v1 }
 0xce1   :  { %v918_v63 = vpop.eup %917 }
 0xce2   :  { %551 = vrot.lane.b32.xlu0 %v918_v63, %s1019_s22 }
 0xce3   :  { %v920_v3 = vpop.eup %919 }
 0xce4   :  { %v529_v4 = vadd.f32 1.0, %v920_v3  ;;  %v709_v3 = vld [vmem:[%s1305_s5 + $0x10] sm:$0xff] }
 0xce5   :  { %748 = vmatpush.msrb.mxu1 %v709_v3 }
 0xce6   :  { %921 = vrcp.f32 %v529_v4  ;;  %v541_v9 = vand.u32 2147483648, %v529_v4  ;;  %vm535_vm13 = vweird.f32 %v529_v4  ;;  %v539_v27 = vand.u32 2147483647, %v529_v4 }
 0xce8   :  { %v542_v10 = vor.u32 1.1754944e-38, %v541_v9  ;;  %vm540_vm15 = vcmp.eq.f32.partialorder %v539_v27, 8.507059e+37 }
 0xcec   :  { %v922_v5 = vpop.eup %921 }
 0xced   :  { %v531_v6 = vmul.f32 %v922_v5, %v529_v4  ;;  %vm536_vm12 = vweird.f32 %v922_v5  ;;  %v708_v4 = vld [vmem:[%s1305_s5 + $0x8] sm:$0xff] }
 0xcee   :  { %vm537_vm14 = vmor %vm535_vm13, %vm536_vm12  ;;  %749 = vmatpush.msrb.mxu1 %v708_v4 }
 0xcef   :  { %v532_v7 = vsub.f32 1.0, %v531_v6 }
 0xcf0   :  { %750 = vmatpush.msrb.mxu1 %v707_v0 }
 0xcf1   :  { %v533_v8 = vmul.f32 %v922_v5, %v532_v7 }
 0xcf3   :  { %v534_v26 = vadd.f32 %v922_v5, %v533_v8 }
 0xcf5   :  { %v538_v38 = vsel %vm537_vm14, %v922_v5, %v534_v26 }
 0xcf6   :  { %v543_v29 = vsel %vm540_vm15, %v542_v10, %v538_v38 }
 0xcf7   :  { %v549_v12 = vmul.f32 %v547_v36, %v543_v29  ;;  %v704_v36 = vsel %vm702_vm4, %v1205_v62, %v1218_v22 }
 0xd54   :  { %v552_v28 = vpop.permute.xlu0 %551 }
 0xd55   :  { %v554_v11 = vmul.f32 %v552_v28, %v543_v29 }
 0xd57   :  { %556 = vrot.lane.b32.xlu1 %v554_v11, %s1020_s4 }
 0xdc9   :  { %v557_v13 = vpop.permute.xlu1 %556 }
 0xdca   :  { %v559_v14 = vadd.f32 %v557_v13, %v549_v12 }
 0xdcc   :  { %923 = vtanh.f32 %v559_v14  ;;  %v614_v46 = vrot.slane %v559_v14, 4 }
 0xdd2   :  { %v924_v15 = vpop.eup %923 }
 0xdd3   :  { %562 = vrot.lane.b32.xlu2 %v924_v15, %s1019_s22 }
 0xe2d   :  { %v563_v16 = vpop.permute.xlu2 %562 }
 0xe2e   :  { %v1236_v17 = vmul.f32 %v563_v16, %v543_v29 }
 0xe30   :  { %v567_v18 = vrot.slane %v1236_v17, 4  ;;  %v705_v62 = vsel %vm702_vm4, %v1227_v57, %v1236_v17 }
 0xe32   :  { %568 = vrot.lane.b32.xlu0 %v567_v18, %s1020_s4 }
 0xea4   :  { %v569_v19 = vpop.permute.xlu0 %568 }
 0xea5   :  { %851 = vmatmul.msk.f32.vlgmr.msra.gmra.mxu2 %vm163_vm10, %v569_v19  ;;  %v876_v19 = vld [vmem:[%s1306_s6] ss:$0 sm:$0xff]  ;;  %s1022_s6 = smov [#allocation4]  }
 0xea6   :  { %s797_s11 = sshll.u32 %s1022_s6, 4  ;;  %s798_s11 = int_to_ptr.vmem [resolvable:$true] %s797_s11 }
 0xf28   :  { %v589_v21 = vpop.f32.mrf.mxu2 }
 0xf29   :  { %v592_v23 = vadd.f32 %v589_v21, %v157_v20 }
 0xf2b   :  { %925 = vtanh.f32 %v592_v23  ;;  %v852_v25 = vmul.f32 -1.442695, %v592_v23 }
 0xf2d   :  { %927 = vpow2.f32 %v852_v25 }
 0xf31   :  { %v926_v24 = vpop.eup %925 }
 0xf32   :  { %618 = vrot.lane.b32.xlu1 %v926_v24, %s1019_s22 }
 0xf33   :  { %v928_v30 = vpop.eup %927 }
 0xf34   :  { %v596_v31 = vadd.f32 1.0, %v928_v30 }
 0xf36   :  { %929 = vrcp.f32 %v596_v31  ;;  %v608_v41 = vand.u32 2147483648, %v596_v31  ;;  %vm602_vm1 = vweird.f32 %v596_v31  ;;  %v606_v34 = vand.u32 2147483647, %v596_v31 }
 0xf38   :  { %v609_v42 = vor.u32 1.1754944e-38, %v608_v41  ;;  %vm607_vm3 = vcmp.eq.f32.partialorder %v606_v34, 8.507059e+37 }
 0xf3c   :  { %v930_v33 = vpop.eup %929 }
 0xf3d   :  { %v598_v35 = vmul.f32 %v930_v33, %v596_v31  ;;  %vm603_vm0 = vweird.f32 %v930_v33 }
 0xf3e   :  { %vm604_vm2 = vmor %vm602_vm1, %vm603_vm0 }
 0xf3f   :  { %v599_v37 = vsub.f32 1.0, %v598_v35 }
 0xf41   :  { %v600_v39 = vmul.f32 %v930_v33, %v599_v37 }
 0xf43   :  { %v601_v40 = vadd.f32 %v930_v33, %v600_v39 }
 0xf45   :  { %v605_v2 = vsel %vm604_vm2, %v930_v33, %v601_v40 }
 0xf46   :  { %v610_v44 = vsel %vm607_vm3, %v609_v42, %v605_v2 }
 0xf47   :  { %v616_v47 = vmul.f32 %v614_v46, %v610_v44 }
 0xfa4   :  { %v619_v43 = vpop.permute.xlu1 %618 }
 0xfa5   :  { %v621_v45 = vmul.f32 %v619_v43, %v610_v44 }
 0xfa7   :  { %623 = vrot.lane.b32.xlu2 %v621_v45, %s1020_s4 }
0x1001   :  { %v624_v48 = vpop.permute.xlu2 %623 }
0x1002   :  { %v626_v49 = vadd.f32 %v624_v48, %v616_v47 }
0x1004   :  { %931 = vtanh.f32 %v626_v49  ;;  %v683_v12 = vrot.slane %v626_v49, 4 }
0x100a   :  { %v932_v50 = vpop.eup %931 }
0x100b   :  { %629 = vrot.lane.b32.xlu0 %v932_v50, %s1019_s22 }
0x107d   :  { %v630_v51 = vpop.permute.xlu0 %629 }
0x107e   :  { %v1246_v52 = vmul.f32 %v630_v51, %v610_v44 }
0x1080   :  { %634 = vrot.lane.b32.xlu1 %v1246_v52, %s1020_s4 }
0x10f2   :  { %v635_v53 = vpop.permute.xlu1 %634 }
0x10f3   :  { %853 = vmatmul.msk.f32.vlgmr.msra.gmra.mxu3 %vm163_vm10, %v635_v53 }
0x1176   :  { %v655_v54 = vpop.f32.mrf.mxu3 }
0x1177   :  { %v659_v55 = vrot.slane %v655_v54, 4 }
0x1179   :  { %v661_v56 = vadd.f32 %v659_v55, %v157_v20 }
0x117b   :  { %933 = vtanh.f32 %v661_v56  ;;  %v854_v60 = vmul.f32 -1.442695, %v661_v56 }
0x117d   :  { %935 = vpow2.f32 %v854_v60 }
0x1181   :  { %v934_v58 = vpop.eup %933 }
0x1182   :  { %687 = vrot.lane.b32.xlu2 %v934_v58, %s1019_s22 }
0x1183   :  { %v936_v61 = vpop.eup %935 }
0x1184   :  { %v665_v63 = vadd.f32 1.0, %v936_v61 }
0x1186   :  { %937 = vrcp.f32 %v665_v63  ;;  %v677_v26 = vand.u32 2147483648, %v665_v63  ;;  %vm671_vm6 = vweird.f32 %v665_v63  ;;  %v675_v9 = vand.u32 2147483647, %v665_v63 }
0x1188   :  { %v678_v38 = vor.u32 1.1754944e-38, %v677_v26  ;;  %vm676_vm8 = vcmp.eq.f32.partialorder %v675_v9, 8.507059e+37 }
0x118a   :  { %719 = vrot.lane.b32.xlu2 %v703_v59, %s1020_s4 }
0x118c   :  { %v938_v32 = vpop.eup %937 }
0x118d   :  { %v667_v5 = vmul.f32 %v938_v32, %v665_v63  ;;  %vm672_vm5 = vweird.f32 %v938_v32 }
0x118e   :  { %vm673_vm7 = vmor %vm671_vm6, %vm672_vm5 }
0x118f   :  { %v668_v6 = vsub.f32 1.0, %v667_v5 }
0x1191   :  { %v669_v7 = vmul.f32 %v938_v32, %v668_v6 }
0x1193   :  { %v670_v8 = vadd.f32 %v938_v32, %v669_v7 }
0x1195   :  { %v674_v27 = vsel %vm673_vm7, %v938_v32, %v670_v8 }
0x1196   :  { %v679_v28 = vsel %vm676_vm8, %v678_v38, %v674_v27 }
0x1197   :  { %v685_v13 = vmul.f32 %v683_v12, %v679_v28 }
0x11dc   :  { %v688_v10 = vpop.permute.xlu2 %687 }
0x11dd   :  { %v690_v29 = vmul.f32 %v688_v10, %v679_v28 }
0x11df   :  { %692 = vrot.lane.b32.xlu0 %v690_v29, %s1020_s4 }
0x11e4   :  { %v720_v11 = vpop.permute.xlu2 %719 }
0x11e5   :  { %855 = vmatmul.msk.f32.vlgmr.msrb.gmra.mxu1 %vm163_vm10, %v720_v11 }
0x11e7   :  { %721 = vrot.lane.b32.xlu0 %v704_v36, %s1020_s4 }
0x1251   :  { %v693_v14 = vpop.permute.xlu0 %692 }
0x1252   :  { %v695_v15 = vadd.f32 %v693_v14, %v685_v13 }
0x1254   :  { %939 = vtanh.f32 %v695_v15 }
0x1259   :  { %v722_v16 = vpop.permute.xlu0 %721 }
0x125a   :  { %v940_v18 = vpop.eup %939  ;;  %856 = vmatmul.msk.f32.gmra.mxu1 %vm163_vm10, %v722_v16 }
0x125b   :  { %698 = vrot.lane.b32.xlu1 %v940_v18, %s1019_s22 }
0x1262   :  { %v752_v20 = vpop.f32.mrf.mxu1 }
0x1263   :  { %v753_v22 = vadd.f32 %v876_v19, %v752_v20  ;;  %723 = vrot.lane.b32.xlu1 %v705_v62, %s1020_s4 }
0x1265   :  { %764 = vst [vmem:[#allocation2] sm:$0xff] %v753_v22 }
0x126b   :  { %775 = vrot.lane.b32.xlu1 %v695_v15, %s1021_s10 }
0x12cd   :  { %v699_v21 = vpop.permute.xlu1 %698 }
0x12ce   :  { %v701_v23 = vmul.f32 %v699_v21, %v679_v28 }
0x12d0   :  { %769 = vrot.lane.b32.xlu0 %v701_v23, %s1020_s4  ;;  %v706_v24 = vsel %vm702_vm4, %v1246_v52, %v701_v23 }
0x12d1   :  { %725 = vrot.lane.b32.xlu2 %v706_v24, %s1020_s4 }
0x12d5   :  { %v724_v25 = vpop.permute.xlu1 %723 }
0x12d6   :  { %857 = vmatmul.msk.f32.gmra.mxu1 %vm163_vm10, %v724_v25 }
0x12d7   :  { %v755_v30 = vpop.f32.mrf.mxu1 }
0x12d8   :  { %v756_v57 = vadd.f32 %v876_v19, %v755_v30 }
0x12da   :  { %765 = vst [vmem:[#allocation2 + $0x8] sm:$0xff] %v756_v57 }
0x12dd   :  { %v776_v17 = vpop.permute.xlu1 %775 }
0x12de   :  { %778 = vst.msk [vmem:[#allocation6 - $0x4] sm:$0xf0] %vm772_vm9, %v776_v17 }
0x132b   :  { %v726_v31 = vpop.permute.xlu2 %725 }
0x132c   :  { %858 = vmatmul.msk.f32.gmra.mxu1 %vm163_vm10, %v726_v31 }
0x1342   :  { %v770_v33 = vpop.permute.xlu0 %769 }
0x1343   :  { %773 = vst.msk [vmem:[#allocation4 - $0x4] sm:$0xf0] %vm772_vm9, %v770_v33 }
0x1344   :  { %802 = dma.vmem_to_hbm [thread:$0]  %s798_s11, 64, %s800_s13, [#allocation5]  }
0x1345   :  { %813 = dma.vmem_to_hbm [thread:$0]  %s809_s15, 64, %s811_s2, [#allocation5]  }
0x1353   :  { %v758_v35 = vpop.f32.mrf.mxu1 }
0x1354   :  { %v759_v37 = vadd.f32 %v876_v19, %v758_v35 }
0x1356   :  { %766 = vst [vmem:[#allocation2 + $0x10] sm:$0xff] %v759_v37 }
0x13a9   :  { %v761_v39 = vpop.f32.mrf.mxu1 }
0x13aa   :  { %v762_v40 = vadd.f32 %v876_v19, %v761_v39 }
0x13ac   :  { %767 = vst [vmem:[#allocation2 + $0x18] sm:$0xff] %v762_v40 }
0x13ad   :  { %791 = dma.vmem_to_hbm [thread:$0]  %s784_s8, 512, %s786_s3, [#allocation3], %s1025_s9, %s1025_s9, %s1026_s21  }
0x13ae   :  { %1013 = dma.done.wait [#allocation3], 512  }
0x13af   :  { %1014 = vsyncadd [#allocation3], 4294966784 }
0x13b0   :  { %1015 = dma.done.wait [#allocation5], 128  }
0x13b1   :  { %1016 = vsyncadd [#allocation5], 4294967168 }
0x13b2   :  { %826 = vsyncpa [#allocation3], 1 }
0x13b3   :  { %827 = vsyncpa [#allocation5], 1 }

</bundles_post_ra>
